<compile_context>
chip_gen: v7x
topology: tpu7x:2x2x1
jax: 0.10.0
libtpu: 0.0.40
codegen_flags: <defaults>
</compile_context>

<pallas_src>
import jax
import jax.numpy as jnp
from jax.experimental import pallas as pl
from jax.experimental.pallas import tpu as pltpu

# Per-array block budget. Double-buffered input + output ~= 4x this (~8 MiB),
# comfortably under v5e's 16 MiB scoped default and v6e/v7x's 32 MiB.
_TARGET_BLOCK_BYTES = 2 * 1024 * 1024


def _fwd_kernel(x_ref, mean_ref, inv_std_ref, o_ref):
    # (x - mean) / std, computed as (x - mean) * (1/std); params kept in f32.
    x = x_ref[...].astype(jnp.float32)
    o_ref[...] = ((x - mean_ref[...]) * inv_std_ref[...]).astype(o_ref.dtype)


def _inv_kernel(x_ref, std_ref, mean_ref, o_ref):
    # x * std + mean; params kept in f32.
    x = x_ref[...].astype(jnp.float32)
    o_ref[...] = (x * std_ref[...] + mean_ref[...]).astype(o_ref.dtype)


def _choose_fold(R, L):
    """When B*C < 8, fold part of the spatial axis into the row axis so vreg
    sublanes are densely used and the row grid axis gets >= 2 steps."""
    if R >= 8:
        return 1
    s_min = -(-8 // R)                       # ceil(8 / R)
    fallback = 1
    for S in range(s_min, 4 * s_min + 1):
        if L % S != 0 or (L // S) < 128:
            continue
        if (L // S) % 128 == 0:
            return S                         # lanes stay 128-aligned (unmasked vst)
        if fallback == 1:
            fallback = S
    return fallback


def _select_tiles(R, L, itemsize):
    """Fixed (tr, tl) tiles; ragged edges are handled by cdiv grids, never by a
    full-dimension fallback block."""
    target_elems = max(8 * 128, _TARGET_BLOCK_BYTES // itemsize)
    # Lane tile first: as long as possible (long contiguous DMA rows), a
    # multiple of 128, capped so an 8-row block stays within the byte budget.
    lane_cap = max(128, ((target_elems // 8) // 128) * 128)
    tl = L if L < 128 else min(lane_cap, (L // 128) * 128)
    # Row tile second: fill the remaining budget with multiples of 8.
    tr = R if R < 8 else max(8, (min(target_elems // tl, R) // 8) * 8)
    return tr, tl


def img_normalization_and_inv(image, rgb_mean, rgb_std, inv: bool, out_dtype=None):
    """Pallas equivalent of ImgNormalizationAndInv.forward.

    image:    (B, C, H, W)
    rgb_mean: (1, C, 1, 1) float32
    rgb_std:  (1, C, 1, 1) float32
    inv:      Python bool (static, mirrors the torch `if inv:` branch)
    out_dtype: optional output dtype (e.g. jnp.bfloat16 to halve write traffic)
    """
    B, C, H, W = image.shape
    out_dtype = image.dtype if out_dtype is None else out_dtype
    R, L = B * C, H * W

    S = _choose_fold(R, L)
    R2, L2 = R * S, L // S

    mean_c = rgb_mean.reshape(C).astype(jnp.float32)
    std_c = rgb_std.reshape(C).astype(jnp.float32)
    if inv:
        a_c, b_c = std_c, mean_c              # x * std + mean
        kernel = _inv_kernel
    else:
        a_c, b_c = mean_c, 1.0 / std_c        # (x - mean) * (1/std)
        kernel = _fwd_kernel

    # Per-row (row = one (b, c, s) slab) f32 parameter columns; row r of the
    # folded view belongs to channel (r // S) % C.
    a_rows = jnp.repeat(jnp.tile(a_c, B), S).reshape(R2, 1)
    b_rows = jnp.repeat(jnp.tile(b_c, B), S).reshape(R2, 1)

    # Lane-dense 2D view (pure row-major reshape, no copy).
    x2 = image.reshape(R2, L2)

    itemsize = max(jnp.dtype(image.dtype).itemsize, jnp.dtype(out_dtype).itemsize)
    tr, tl = _select_tiles(R2, L2, itemsize)

    # v7x: if the whole tensor would be a single block but is non-trivial,
    # split the row axis so both TensorCores stream concurrently.
    if (pl.cdiv(R2, tr) == 1 and pl.cdiv(L2, tl) == 1
            and R2 * L2 * itemsize > 256 * 1024 and R2 >= 16):
        tr = max(8, ((tr // 2) // 8) * 8)

    # Rows = slow axis 0 so the (tr, 1) parameter blocks are fetched once per
    # row block, not per inner lane step.
    grid = (pl.cdiv(R2, tr), pl.cdiv(L2, tl))

    out2 = pl.pallas_call(
        kernel,
        out_shape=jax.ShapeDtypeStruct((R2, L2), out_dtype),
        grid=grid,
        in_specs=[
            pl.BlockSpec((tr, tl), lambda i, j: (i, j)),
            pl.BlockSpec((tr, 1), lambda i, j: (i, 0)),
            pl.BlockSpec((tr, 1), lambda i, j: (i, 0)),
        ],
        out_specs=pl.BlockSpec((tr, tl), lambda i, j: (i, j)),
        compiler_params=pltpu.CompilerParams(
            dimension_semantics=("parallel", "parallel"),
            vmem_limit_bytes=32 * 1024 * 1024,
        ),
    )(x2, a_rows, b_rows)

    return out2.reshape(B, C, H, W)


if __name__ == "__main__":
    key = jax.random.PRNGKey(0)

    # Module buffers (RGB_mean / RGB_std lists of 3, viewed as (1, 3, 1, 1)).
    RGB_mean = [0.485, 0.456, 0.406]
    RGB_std = [0.229, 0.224, 0.225]
    rgb_mean = jnp.asarray(RGB_mean, dtype=jnp.float32).reshape(1, 3, 1, 1)
    rgb_std = jnp.asarray(RGB_std, dtype=jnp.float32).reshape(1, 3, 1, 1)

    # Small deterministic input: batch=2, channels=3 (RGB), spatial=16x16.
    B, C, H, W = 2, 3, 16, 16
    image = jax.random.uniform(key, (B, C, H, W), dtype=jnp.float32)

    # Forward normalization (inv=False)
    normed = img_normalization_and_inv(image, rgb_mean, rgb_std, inv=False)
    jax.block_until_ready(normed)
    ref_normed = (image - rgb_mean) / rgb_std
    assert jnp.allclose(normed, ref_normed, atol=1e-5, rtol=1e-5)

    # Inverse normalization (inv=True)
    denormed = img_normalization_and_inv(normed, rgb_mean, rgb_std, inv=True)
    jax.block_until_ready(denormed)
    ref_denormed = normed * rgb_std + rgb_mean
    assert jnp.allclose(denormed, ref_denormed, atol=1e-5, rtol=1e-5)
    # Round-trip sanity: inv(norm(x)) ~= x
    assert jnp.allclose(denormed, image, atol=1e-5, rtol=1e-5)

    print("KERNEL_OK")
</pallas_src>

<mosaic_0001>
module attributes {stable_mosaic.version = 11 : i64} {
  func.func @_fwd_kernel(%arg0: i32, %arg1: i32, %arg2: memref<8x128xf32, #tpu.memory_space<vmem>>, %arg3: memref<8x1xf32, #tpu.memory_space<vmem>>, %arg4: memref<8x1xf32, #tpu.memory_space<vmem>>, %arg5: memref<8x128xf32, #tpu.memory_space<vmem>>) attributes {dimension_semantics = [#tpu.dimension_semantics<parallel>, #tpu.dimension_semantics<parallel>], iteration_bounds = array<i64: 2, 1>, scalar_prefetch = 0 : i64, scratch_operands = 0 : i64, tpu.core_type = #tpu.core_type<tc>, window_params = [{transform_indices = @transform_0, window_bounds = array<i64: 8, 128>}, {transform_indices = @transform_1, window_bounds = array<i64: 8, 1>}, {transform_indices = @transform_2, window_bounds = array<i64: 8, 1>}, {transform_indices = @transform_3, window_bounds = array<i64: 8, 128>}]} {
    %c0 = arith.constant 0 : index
    %c0_0 = arith.constant 0 : index
    %0 = vector.load %arg2[%c0, %c0_0] : memref<8x128xf32, #tpu.memory_space<vmem>>, vector<8x128xf32>
    %c0_1 = arith.constant 0 : index
    %c0_2 = arith.constant 0 : index
    %1 = vector.load %arg3[%c0_1, %c0_2] : memref<8x1xf32, #tpu.memory_space<vmem>>, vector<8x1xf32>
    %2 = vector.broadcast %1 : vector<8x1xf32> to vector<8x128xf32>
    %3 = arith.subf %0, %2 : vector<8x128xf32>
    %c0_3 = arith.constant 0 : index
    %c0_4 = arith.constant 0 : index
    %4 = vector.load %arg4[%c0_3, %c0_4] : memref<8x1xf32, #tpu.memory_space<vmem>>, vector<8x1xf32>
    %5 = vector.broadcast %4 : vector<8x1xf32> to vector<8x128xf32>
    %6 = arith.mulf %3, %5 : vector<8x128xf32>
    %c0_5 = arith.constant 0 : index
    %c0_6 = arith.constant 0 : index
    %7 = vector.load %arg5[%c0_5, %c0_6] : memref<8x128xf32, #tpu.memory_space<vmem>>, vector<8x128xf32>
    tpu.vector_store %arg5[%c0_5, %c0_6], %6 {strides = array<i32>} : memref<8x128xf32, #tpu.memory_space<vmem>>, vector<8x128xf32>,
    return
  }
  func.func @transform_0(%arg0: i32, %arg1: i32) -> (i32, i32) {
    %c0_i32 = arith.constant 0 : i32
    return %arg0, %arg1 : i32, i32
  }
  func.func @transform_1(%arg0: i32, %arg1: i32) -> (i32, i32) {
    %c0_i32 = arith.constant 0 : i32
    %c0_i32_0 = arith.constant 0 : i32
    return %arg0, %c0_i32 : i32, i32
  }
  func.func @transform_2(%arg0: i32, %arg1: i32) -> (i32, i32) {
    %c0_i32 = arith.constant 0 : i32
    %c0_i32_0 = arith.constant 0 : i32
    return %arg0, %c0_i32 : i32, i32
  }
  func.func @transform_3(%arg0: i32, %arg1: i32) -> (i32, i32) {
    %c0_i32 = arith.constant 0 : i32
    return %arg0, %arg1 : i32, i32
  }
}

</mosaic_0001>

<bundles_post_ra>
// kernel: tpu_custom_call.1
= control target key start
LH: loop header
LB: loop body
LE: loop exit
PB: predicated region body
PF: predicated region fallthrough
CT: control target
= control target key end

     0   :  { %8 = vsyncpa [#allocation3], 0  ;;  %s641_s0 = inlined_call_operand.vmem [shape: f32[12,128], index: 0, kind: input, shape index: {}]   ;;  %s642_s1 = inlined_call_operand.vmem [shape: f32[12,1], index: 1, kind: input, shape index: {}]   ;;  %s643_s2 = inlined_call_operand.vmem [shape: f32[12,1], index: 2, kind: input, shape index: {}]   ;;  %s644_s3 = inlined_call_operand.hbm [shape: f32[12,128], index: 3, kind: output, shape index: {}]  }
   0x1   :  { %10 = vsyncpa [#allocation3 + $0x1], 0  ;;  %s523_s12 = smov 0   ;;  %s525_s13 = smov 0  }
   0x2   :  { %s527_s14 = smov 0   ;;  %s529_s15 = smov 0  }
   0x3   :  { %s531_s16 = smov 0   ;;  %s533_s17 = smov 0  }
   0x4 LB: > { %s351_s18 = sadd.s32 4294967295, %s499_s17   ;;  %s352_s19 = sadd.s32 4294967294, %s499_s17   ;;  %s499_s17 = sphi %s533_s17, %s16_s17   ;;  %s495_s16 = sphi %s531_s16, %s651_s16   ;;  %s491_s15 = sphi %s529_s15, %s650_s15   ;;  %s487_s14 = sphi %s527_s14, %s649_s14   ;;  %s483_s13 = sphi %s525_s13, %s648_s13   ;;  %s479_s12 = sphi %s523_s12, %s647_s12  }
   0x5   : > { %s28_s20 = sadd.s32 1, %s495_s16  ;;  %s117_s21 = sadd.s32 1, %s487_s14 }
   0x6   : > { %p30_p0 = scmp.ge.s32.totalorder %s28_s20, 2  ;;  %p127_p1 = scmp.ne.s32.totalorder %s487_s14, %s483_s13 }
   0x7   : > { %p128_p2 = scmp.eq.s32.totalorder %s351_s18, 1  ;;  %p133_p3 = scmp.ne.s32.totalorder %s483_s13, %s479_s12 }
   0x8   : > { %s653_s20 = smov (%p30_p0, %s28_s20), 0  ;;  %p134_p5 = scmp.eq.s32.totalorder %s352_s19, 1 }
   0x9   : > { %p563_p4 = por %p128_p2, %p127_p1  ;;  %s112_s23 = ssub.s32 %s495_s16, %s653_s20 }
   0xa   : > { %p355_p6 = scmp.ge.s32.totalorder %s499_s17, 1  ;;  %p115_p7 = scmp.eq.s32.totalorder %s112_s23, 0 }
   0xb   : > { %p570_p8 = por %p134_p5, %p133_p3  ;;  %p176_p9 = scmp.lt.s32.totalorder %s499_s17, 3 }
   0xc   : > { %s576_s25 = scalar_select %p115_p7, %s487_s14, %s117_s21  }
   0xd   : > { %p177_p10 = pnand %p355_p6, %p176_p9 }
   0xe   : > { %p210_p11 = scmp.lt.s32.totalorder (!%p177_p10), %s491_s15, 1  ;;  %v501_v0 = vmov (!%p177_p10), 0   ;;  %s207_s7 = sand.u32 (!%p177_p10), 1, %s483_s13  }
   0xf   : > { %180 = sbr.rel (%p177_p10) target bundleno = 175 (0xaf), region = 32  ;;  %420 = vset.pattern.permute.xlu0 (!%p177_p10), %v501_v0  ;;  %s356_s8 = sshll.u32 (!%p177_p10), %s207_s7, 3 }
  0x10   : > { %s361_s18 = sshll.u32 (!%p177_p10), %s491_s15, 7  ;;  %s209_s19 = scalar_lea.vmem (!%p177_p10), [#allocation2], %s356_s8 }
  0x11   : > { %s256_s21 = sshll.u32 (!%p177_p10), %s209_s19, 4  ;;  %s594_s28 = scalar_lea.hbm (!%p177_p10), %s644_s3, %s361_s18  ;;  %s596_s21 = int_to_ptr.vmem [resolvable:$true] %s256_s21 }
  0x12   : > { %s421_s29 = scalar_lea.vmem (!%p177_p10), %s596_s21, 128 }
  0x13   : > { %p422_p12 = scmp.ne.s32.totalorder (!%p177_p10), %s596_s21, %s421_s29 }
  0x15   : > { %p423_p13 = pnand (!%p177_p10), %p422_p12, %p563_p4 }
  0x16   : > { %s211_s26 = scalar_select %p210_p11, %s491_s15, 1 }
  0x17   : > { %p424_p0 = pneg %p423_p13  ;;  %s502_s15 = smov [#allocation2]  }
  0x18   : > { %s357_s27 = sshll.u32 %s211_s26, 3 }
  0x19   : > { %s220_s30 = scalar_lea.vmem %s642_s1, %s357_s27  ;;  %s224_s6 = scalar_lea.vmem %s643_s2, %s357_s27 }
  0x1a   : > { %v226_v1 = vld [vmem:[%s220_s30] sm:$0xff]  ;;  %s216_s11 = scalar_lea.vmem %s641_s0, %s357_s27  ;;  %s242_s27 = scalar_lea.sflag [#allocation3], %s207_s7 }
  0x1b   : > { %229 = vperm.xlu0 %420, %v226_v1   ;;  %v233_v2 = vld [vmem:[%s224_s6] sm:$0xff]  ;;  %s425_s30 = sshll.u32 %s502_s15, 4  ;;  %s426_s30 = int_to_ptr.vmem [resolvable:$false] %s425_s30 }
  0x1c   : > { %v225_v4 = vld [vmem:[%s216_s11] sm:$0xff]  ;;  %s427_s4 = scalar_lea.vmem %s426_s30, 256  ;;  %p428_p1 = scmp.lt.s32.totalorder %s596_s21, %s426_s30 }
  0x1d   : > { %p429_p2 = scmp.lt.s32.totalorder %s427_s4, %s421_s29 }
  0x1f   : > { %236 = vperm.xlu0 %420, %v233_v2   ;;  %p430_p3 = por %p429_p2, %p428_p1 }
  0x21   : > { %p431_p5 = pnand %p430_p3, %p424_p0 }
  0x9a   : > { %v230_v3 = vpop.permute.xlu0 %229 }
  0x9b   : > { %v232_v5 = vsub.f32 %v225_v4, %v230_v3 }
  0x9e   : > { %v237_v6 = vpop.permute.xlu0 %236 }
  0x9f   : > { %v239_v7 = vmul.f32 %v237_v6, %v232_v5 }
  0xa1   : > { %240 = vst [vmem:[%s209_s19] sm:$0xff] %v239_v7 }
  0xa2   : > { %434 = shalt.err (!%p431_p5)
}
  0xa3   : > { %s435_s5 = scalar_lea.hbm %s594_s28, 128  ;;  %s439_s8 = scalar_lea.hbm %s644_s3, 256 }
  0xa4   : > { %p436_p6 = scmp.ne.s32.totalorder %s594_s28, %s435_s5  ;;  %p440_p10 = scmp.lt.u32.totalorder %s594_s28, %s644_s3 }
  0xa5   : > { %p441_p11 = scmp.lt.u32.totalorder %s439_s8, %s435_s5  ;;  %p443_p13 = scmp.lt.u32.totalorder %s435_s5, %s594_s28 }
  0xa6   : > { %p437_p7 = pnand %p436_p6, %p563_p4 }
  0xa7   : > { %p442_p12 = por %p441_p11, %p440_p10 }
  0xa8   : > { %p438_p9 = pneg %p437_p7 }
  0xa9   : > { %p444_p0 = por %p443_p13, %p442_p12 }
  0xab   : > { %p445_p1 = pnand %p444_p0, %p438_p9 }
  0xad   : > { %448 = shalt.err (!%p445_p1)
}
  0xae   : > { %364 = dma.vmem_to_hbm [thread:$0]  (%p563_p4), %s596_s21, 128, %s594_s28, %s242_s27  }
  0xaf PF: > { %p370_p2 = scmp.ge.s32.totalorder %s499_s17, 2  ;;  %s268_s11 = sand.u32 1, %s479_s12  }
  0xb0   : > { %s269_s18 = scalar_lea.sflag [#allocation3], %s268_s11 }
  0xb1   : > { %p367_p3 = pnand %p370_p2, %p570_p8 }
  0xb3   : > { %474 = dma.done.wait (!%p367_p3), %s269_s18, 128  }
  0xb4   : > { %476 = vsyncadd (!%p367_p3), %s269_s18, 4294967168  ;;  %s16_s17 = sadd.s32 1, %s499_s17   ;;  %s647_s12 = smov %s483_s13 }
  0xb5   : > { %p13_p5 = scmp.ge.s32.totalorder %s16_s17, 4   ;;  %s648_s13 = smov %s487_s14 }
  0xb6   : > { %s649_s14 = smov %s576_s25  ;;  %s650_s15 = smov %s495_s16 }
  0xb7   : > { %s651_s16 = smov %s653_s20  ;;  %15 = sbr.rel (!%p13_p5) target bundleno = 4 (0x4), region = 73 }
  0xbe   :  { %274 = vsyncpa [#allocation3], 1 }
  0xbf   :  { %276 = vsyncpa [#allocation3 + $0x1], 1 }

</bundles_post_ra>
